<compile_context>
chip_gen: v7x
topology: tpu7x:2x2x1
jax: 0.10.0
libtpu: 0.0.40
codegen_flags: <defaults>
</compile_context>

<pallas_src>
import jax
import jax.numpy as jnp
from jax.experimental import pallas as pl
from jax.experimental.pallas import tpu as pltpu

LANE = 128                 # vreg lane width
MAX_SUBLANE_TILE = 2048    # 2048 * 128 * 4 B = 1 MiB per f32 block


def _round_up(x, m):
    return (x + m - 1) // m * m


def _z_update_kernel(thr_ref, z_ref, o_ref):
    """thr_ref: SMEM (N,) f32; z_ref / o_ref: VMEM (1, sub_tile, 128) in input dtype."""
    b = pl.program_id(0)
    thr = thr_ref[b]                                   # per-batch scalar lam / rho1
    zt = z_ref[...].astype(jnp.float32)                # compute in f32
    mag = jnp.maximum(jnp.abs(zt) - thr, 0.0)
    # sign(z) * mag: mag == 0 when z == 0 (thr >= 0), so a 2-way select suffices.
    o_ref[...] = jnp.where(zt >= 0.0, mag, -mag).astype(o_ref.dtype)


def z_update(z_tilde, lam, rho1):
    """Pallas TPU forward of Z_Update: sign(z_tilde) * max(|z_tilde| - lam/rho1, 0).

    z_tilde : (N, C, H, W) float array (dtype preserved)
    lam     : scalar (python float or 0-d / 1-element array)
    rho1    : per-batch positive scalar, shape (), (N,), (N,1) or (N,1,1,1)
    """
    z_tilde = jnp.asarray(z_tilde)
    dtype = z_tilde.dtype
    orig_shape = z_tilde.shape
    N = int(orig_shape[0])
    hw = 1
    for d in orig_shape[1:]:
        hw *= int(d)

    # Per-batch scalar threshold lam / rho1 -> (N,) f32 (lives in SMEM in the kernel).
    # TODO(synk): a fully per-element (image-sized) rho1/lam tensor is not supported
    # by this SMEM-scalar path; Unrolled_ADMM always passes a per-batch scalar rho1.
    lam_f = jnp.asarray(lam, jnp.float32).reshape(-1)
    rho1_f = jnp.asarray(rho1, jnp.float32).reshape(-1)
    thr = jnp.broadcast_to(lam_f / rho1_f, (N,)).astype(jnp.float32)

    # Lane-dense layout (N, rows, 128).  Pad only to the minimal 128-lane boundary.
    hw_p = _round_up(hw, LANE)
    rows = hw_p // LANE

    z2 = z_tilde.reshape(N, hw)
    if hw_p != hw:
        z2 = jnp.pad(z2, ((0, 0), (0, hw_p - hw)))
    z3 = z2.reshape(N, rows, LANE)

    # Sublane tile: multiple of the dtype's min tile (8 f32 / 16 bf16 / 32 int8),
    # or the full rows extent when that is smaller ("equal the full dim" is allowed).
    sub_mult = max(8, 32 // max(1, jnp.dtype(dtype).itemsize))
    if rows <= sub_mult:
        sub_tile = rows
    else:
        sub_tile = min(MAX_SUBLANE_TILE, (rows // sub_mult) * sub_mult)

    grid = (N, pl.cdiv(rows, sub_tile))      # ragged last block handled by Pallas
    block = (1, sub_tile, LANE)

    out = pl.pallas_call(
        _z_update_kernel,
        out_shape=jax.ShapeDtypeStruct((N, rows, LANE), dtype),
        grid=grid,
        in_specs=[
            pl.BlockSpec(memory_space=pltpu.MemorySpace.SMEM),   # thr (N,) scalars
            pl.BlockSpec(block, lambda b, t: (b, t, 0)),         # z_tilde tiles
        ],
        out_specs=pl.BlockSpec(block, lambda b, t: (b, t, 0)),
        compiler_params=pltpu.CompilerParams(
            dimension_semantics=("parallel", "parallel"),  # megacore sharding on v7x
            vmem_limit_bytes=32 * 1024 * 1024,             # working set << limit
        ),
    )(thr, z3)

    out = out.reshape(N, hw_p)
    if hw_p != hw:
        out = out[:, :hw]
    return out.reshape(orig_shape)


if __name__ == "__main__":
    key = jax.random.PRNGKey(0)
    k1, k2, k3 = jax.random.split(key, 3)

    # Shapes consistent with Unrolled_ADMM usage: z_tilde = x + u1 is an (N,1,H,W)
    # image batch, rho1 is a per-batch positive scalar, lam = 0.01.
    N, C, H, W = 2, 1, 32, 32
    z_tilde = jax.random.normal(k1, (N, C, H, W), jnp.float32)
    rho1 = jax.random.uniform(k2, (N, 1, 1, 1), jnp.float32, 0.5, 2.0)
    lam = 0.01

    fwd = jax.jit(z_update)

    # 1) Aligned f32 case (no pad / no slice path).
    out = jax.block_until_ready(fwd(z_tilde, lam, rho1))
    ref = jnp.sign(z_tilde) * jnp.maximum(jnp.abs(z_tilde) - lam / rho1, 0.0)
    assert out.shape == z_tilde.shape and out.dtype == z_tilde.dtype
    assert bool(jnp.all(jnp.isfinite(out)))
    assert bool(jnp.allclose(out, ref, atol=1e-6, rtol=1e-6))

    # 2) Non-lane-aligned spatial size (24*24=576 -> minimal pad to 640, then slice).
    z_tilde2 = jax.random.normal(k3, (N, C, 24, 24), jnp.float32)
    out2 = jax.block_until_ready(fwd(z_tilde2, lam, rho1))
    ref2 = jnp.sign(z_tilde2) * jnp.maximum(jnp.abs(z_tilde2) - lam / rho1, 0.0)
    assert bool(jnp.allclose(out2, ref2, atol=1e-6, rtol=1e-6))

    # 3) bf16 input stays bf16 end-to-end (half the HBM bytes), math in f32 in-kernel.
    z_bf16 = z_tilde.astype(jnp.bfloat16)
    out3 = jax.block_until_ready(fwd(z_bf16, lam, rho1))
    z32 = z_bf16.astype(jnp.float32)
    ref3 = (jnp.sign(z32) * jnp.maximum(jnp.abs(z32) - lam / rho1, 0.0)).astype(jnp.bfloat16)
    assert out3.dtype == jnp.bfloat16
    assert bool(jnp.allclose(out3.astype(jnp.float32), ref3.astype(jnp.float32),
                             atol=1e-2, rtol=1e-2))

    print("KERNEL_OK")
</pallas_src>

<mosaic_0001>
module attributes {stable_mosaic.version = 11 : i64} {
  func.func @_z_update_kernel(%arg0: i32, %arg1: i32, %arg2: memref<2xf32, #tpu.memory_space<smem>>, %arg3: memref<1x8x128xf32, #tpu.memory_space<vmem>>, %arg4: memref<1x8x128xf32, #tpu.memory_space<vmem>>) attributes {dimension_semantics = [#tpu.dimension_semantics<parallel>, #tpu.dimension_semantics<parallel>], iteration_bounds = array<i64: 2, 1>, scalar_prefetch = 0 : i64, scratch_operands = 0 : i64, tpu.core_type = #tpu.core_type<tc>, window_params = [{transform_indices = @transform_0, window_bounds = array<i64: 2>}, {transform_indices = @transform_1, window_bounds = array<i64: 1, 8, 128>}, {transform_indices = @transform_2, window_bounds = array<i64: 1, 8, 128>}]} {
    %0 = arith.index_cast %arg0 : i32 to index
    %1 = memref.load %arg2[%0] : memref<2xf32, #tpu.memory_space<smem>>
    %c0 = arith.constant 0 : index
    %c0_0 = arith.constant 0 : index
    %c0_1 = arith.constant 0 : index
    %2 = vector.load %arg3[%c0, %c0_0, %c0_1] : memref<1x8x128xf32, #tpu.memory_space<vmem>>, vector<1x8x128xf32>
    %3 = math.absf %2 : vector<1x8x128xf32>
    %4 = vector.broadcast %1 : f32 to vector<1x8x128xf32>
    %5 = arith.subf %3, %4 : vector<1x8x128xf32>
    %cst = arith.constant 0.000000e+00 : f32
    %6 = vector.broadcast %cst : f32 to vector<1x8x128xf32>
    %7 = arith.maximumf %5, %6 : vector<1x8x128xf32>
    %cst_2 = arith.constant 0.000000e+00 : f32
    %8 = vector.broadcast %cst_2 : f32 to vector<1x8x128xf32>
    %9 = arith.cmpf oge, %2, %8 : vector<1x8x128xf32>
    %cst_3 = arith.constant 0.000000e+00 : f32
    %10 = vector.broadcast %cst_3 : f32 to vector<1x8x128xf32>
    %11 = arith.subf %10, %7 : vector<1x8x128xf32>
    %12 = arith.select %9, %7, %11 : vector<1x8x128xi1>, vector<1x8x128xf32>
    %c0_4 = arith.constant 0 : index
    %c0_5 = arith.constant 0 : index
    %c0_6 = arith.constant 0 : index
    %13 = vector.load %arg4[%c0_4, %c0_5, %c0_6] : memref<1x8x128xf32, #tpu.memory_space<vmem>>, vector<1x8x128xf32>
    tpu.vector_store %arg4[%c0_4, %c0_5, %c0_6], %12 {strides = array<i32>} : memref<1x8x128xf32, #tpu.memory_space<vmem>>, vector<1x8x128xf32>,
    return
  }
  func.func @transform_0(%arg0: i32, %arg1: i32) -> i32 {
    %c0_i32 = arith.constant 0 : i32
    %c0_i32_0 = arith.constant 0 : i32
    return %c0_i32 : i32
  }
  func.func @transform_1(%arg0: i32, %arg1: i32) -> (i32, i32, i32) {
    %c0_i32 = arith.constant 0 : i32
    %c0_i32_0 = arith.constant 0 : i32
    return %arg0, %arg1, %c0_i32 : i32, i32, i32
  }
  func.func @transform_2(%arg0: i32, %arg1: i32) -> (i32, i32, i32) {
    %c0_i32 = arith.constant 0 : i32
    %c0_i32_0 = arith.constant 0 : i32
    return %arg0, %arg1, %c0_i32 : i32, i32, i32
  }
}

</mosaic_0001>

<bundles_post_ra>
// kernel: z_update.1
= control target key start
LH: loop header
LB: loop body
LE: loop exit
PB: predicated region body
PF: predicated region fallthrough
CT: control target
= control target key end

     0   :  { %7 = vsyncpa [#allocation3], 0  ;;  %s386_s9 = smov 0   ;;  %s388_s10 = smov 0   ;;  %s446_s0 = inlined_call_operand.vmem [shape: f32[2], index: 0, kind: input, shape index: {}]   ;;  %s447_s1 = inlined_call_operand.vmem [shape: f32[2,8,128], index: 1, kind: input, shape index: {}]   ;;  %s448_s2 = inlined_call_operand.vmem [shape: f32[2,8,128], index: 2, kind: output, shape index: {}]  }
   0x1   :  { %s390_s11 = smov 0  }
   0x2 LB: > { %s281_s12 = sadd.s32 4294967295, %s368_s11   ;;  %s25_s13 = sadd.s32 1, %s364_s10  ;;  %s368_s11 = sphi %s390_s11, %s13_s11   ;;  %s364_s10 = sphi %s388_s10, %s452_s10   ;;  %s360_s9 = sphi %s386_s9, %s451_s9  }
   0x3   : > { %p27_p0 = scmp.ge.s32.totalorder %s25_s13, 2  ;;  %p283_p1 = scmp.ge.s32.totalorder %s368_s11, 1 }
   0x4   : > { %p107_p2 = scmp.lt.s32.totalorder %s368_s11, 3  ;;  %p411_p4 = scmp.eq.s32.totalorder %s281_s12, 0 }
   0x5   : > { %s454_s13 = smov (%p27_p0, %s25_s13), 0  ;;  %s120_s18 = sshll.u32 %s446_s0, 4  ;;  %s121_s18 = int_to_ptr.vmem [resolvable:$true] %s120_s18 }
   0x6   : > { %p407_p3 = pnand %p283_p1, %p107_p2  ;;  %s327_s19 = scalar_lea.vmem %s121_s18, 16 }
   0x7   : > { %p328_p7 = scmp.ne.s32.totalorder %s121_s18, %s327_s19  ;;  %p335_p11 = scmp.lt.s32.totalorder %s121_s18, %s121_s18 }
   0x8   : > { %p296_p5 = pneg %p407_p3  ;;  %p336_p12 = scmp.lt.s32.totalorder %s327_s19, %s327_s19 }
   0xa   : > { %p297_p6 = pnand %p411_p4, %p296_p5  ;;  %p337_p13 = por %p336_p12, %p335_p11 }
   0xc   : > { %p329_p8 = pneg %p297_p6 }
   0xe   : > { %p330_p9 = pnand %p329_p8, %p328_p7 }
  0x10   : > { %p331_p10 = pneg %p330_p9 }
  0x12   : > { %p338_p0 = pnand %p337_p13, %p331_p10 }
  0x14   : > { %341 = shalt.err (!%p338_p0)
}
  0x15   : > { %s370_s20 = smov [#allocation2]   ;;  %143 = sbr.rel (%p407_p3) target bundleno = 47 (0x2f), region = 28 }
  0x16   : > { %299 = dma.vmem_to_smem (!%p297_p6), %s121_s18, 16, %s370_s20, [#allocation3]  }
  0x1c   : > { %355 = dma.done.wait (%p411_p4), [#allocation3], 16  }
  0x1d   : > { %357 = vsyncadd (%p411_p4), [#allocation3], 4294967280 }
  0x1e   : > { %149 = sfence }
  0x1f   : > { %p170_p1 = scmp.lt.s32.totalorder %s360_s9, 1  ;;  %s184_s21 = sld [smem:[#allocation2 + %s360_s9]] }
  0x21   : > { %s456_s9 = smov (!%p170_p1, %s360_s9), 1 }
  0x22   : > { %s288_s22 = sshll.u32 %s456_s9, 3 }
  0x23   : > { %s176_s25 = scalar_lea.vmem %s447_s1, %s288_s22  ;;  %s183_s28 = scalar_lea.vmem %s448_s2, %s288_s22 }
  0x24   : > { %v185_v0 = vld [vmem:[%s176_s25] sm:$0xff] }
  0x25   : > { %v187_v1 = vstv %s184_s21  ;;  %v186_v2 = vand.u32 2147483647, %v185_v0  ;;  %vm190_vm0 = vcmp.ge.f32.partialorder %v185_v0, 0.0 }
  0x27   : > { %v188_v3 = vsub.f32 %v186_v2, %v187_v1 }
  0x29   : > { %v189_v4 = vmax.f32 %v188_v3, 0.0 }
  0x2b   : > { %v191_v5 = vsub.f32 0.0, %v189_v4 }
  0x2d   : > { %v192_v6 = vsel %vm190_vm0, %v189_v4, %v191_v5 }
  0x2e   : > { %193 = vst [vmem:[%s183_s28] sm:$0xff] %v192_v6 }
  0x2f PF: > { %s13_s11 = sadd.s32 1, %s368_s11   ;;  %s451_s9 = smov %s364_s10 }
  0x30   : > { %p10_p2 = scmp.ge.s32.totalorder %s13_s11, 4   ;;  %s452_s10 = smov %s454_s13 }
  0x32   :  { %12 = sbr.rel (!%p10_p2) target bundleno = 2 (0x2), region = 63 }
  0x39   :  { %219 = vsyncpa [#allocation3], 1 }
  0x3a   :  { %221 = vsyncpa [#allocation3 + $0x1], 1 }

</bundles_post_ra>
